<compile_context>
chip_gen: v5e
topology: v5e:2x2
jax: 0.10.0
libtpu: 0.0.40
codegen_flags: <defaults>
</compile_context>

<pallas_src>
import jax
import jax.numpy as jnp
from jax.experimental import pallas as pl
from jax.experimental.pallas import tpu as pltpu

LANES = 128        # lane width (last dim)
SUB = 8            # sublane height of one vreg
TM_MAX = 1024      # max rows per grid step: (1024,128) f32 block = 512 KiB
PAD_LOGIT = -100.0  # finite (so -100*0 == 0); sigmoid/log terms are exactly 0


def _combined_loss_kernel(p_ref, t_ref, o_ref, acc_ref):
    # grid = (chunks, blocks_per_chunk); axis 1 is the reduction axis.
    j = pl.program_id(1)

    @pl.when(j == 0)
    def _():
        acc_ref[...] = jnp.zeros_like(acc_ref)

    x = p_ref[...].astype(jnp.float32)
    t = t_ref[...].astype(jnp.float32)

    s = jax.nn.sigmoid(x)
    # Numerically stable BCE-with-logits (== torch.nn.BCEWithLogitsLoss):
    #   max(x,0) - x*t + log(1 + exp(-|x|))  ==  max(x,0) - x*t - log(max(s,1-s))
    bce = jnp.maximum(x, 0.0) - x * t - jnp.log(jnp.maximum(s, 1.0 - s))

    tm = x.shape[0]
    g = tm // SUB
    # Fold each (tm,128) term into an (8,128) vreg slab: pure VALU adds,
    # no partial-tile stores, no cross-lane work in the hot loop.
    acc_ref[0, :, :] += bce.reshape(g, SUB, LANES).sum(axis=0)
    acc_ref[1, :, :] += (s * t).reshape(g, SUB, LANES).sum(axis=0)
    acc_ref[2, :, :] += s.reshape(g, SUB, LANES).sum(axis=0)
    acc_ref[3, :, :] += t.reshape(g, SUB, LANES).sum(axis=0)

    @pl.when(j == pl.num_programs(1) - 1)
    def _():
        # Dump the raw per-chunk slabs; final reduction happens outside.
        o_ref[0] = acc_ref[...]


def combined_loss(predictions, targets):
    """BCEWithLogitsLoss(mean) + DiceLoss(smooth=1); returns a scalar f32."""
    assert predictions.shape == targets.shape
    n = predictions.size                       # static element count
    pf = predictions.reshape(-1)               # keep native dtype (no upcast copy)
    tf = targets.reshape(-1)

    rows = -(-n // LANES)                                  # ceil(n / 128)
    tm = min(TM_MAX, ((rows + SUB - 1) // SUB) * SUB)      # rows/block, mult of 8
    total_blocks = -(-rows // tm)
    # Megacore (v7x) split: only when it doesn't force an extra padded block
    # for small/odd inputs.
    if total_blocks >= 2 and (total_blocks % 2 == 0 or total_blocks >= 8):
        nc = 2
    else:
        nc = 1
    bpc = -(-total_blocks // nc)               # blocks per chunk
    padded_rows = nc * bpc * tm

    pad = padded_rows * LANES - n
    if pad:
        # Padded logits of -100 with target 0 contribute exactly 0 to all four
        # partial sums, so the kernel needs no per-element mask.
        pf = jnp.pad(pf, (0, pad), constant_values=PAD_LOGIT)
        tf = jnp.pad(tf, (0, pad))
    pf = pf.reshape(padded_rows, LANES)
    tf = tf.reshape(padded_rows, LANES)

    parts = pl.pallas_call(
        _combined_loss_kernel,
        out_shape=jax.ShapeDtypeStruct((nc, 4, SUB, LANES), jnp.float32),
        grid_spec=pltpu.PrefetchScalarGridSpec(
            num_scalar_prefetch=0,
            grid=(nc, bpc),
            in_specs=[
                pl.BlockSpec((tm, LANES), lambda c, j: (c * bpc + j, 0)),
                pl.BlockSpec((tm, LANES), lambda c, j: (c * bpc + j, 0)),
            ],
            out_specs=pl.BlockSpec((1, 4, SUB, LANES), lambda c, j: (c, 0, 0, 0)),
            scratch_shapes=[pltpu.VMEM((4, SUB, LANES), jnp.float32)],
        ),
        compiler_params=pltpu.CompilerParams(
            dimension_semantics=("parallel", "arbitrary")),
    )(pf, tf)

    sums = jnp.sum(parts, axis=(0, 2, 3))      # [bce_sum, intersection, p_sum, t_sum]
    bce_mean = sums[0] / float(n)
    smooth = 1.0
    dice = (2.0 * sums[1] + smooth) / (sums[2] + sums[3] + smooth)
    return bce_mean + (1.0 - dice)


def _reference(predictions, targets):
    x = predictions.reshape(-1).astype(jnp.float32)
    t = targets.reshape(-1).astype(jnp.float32)
    bce = jnp.mean(jnp.maximum(x, 0.0) - x * t + jnp.log1p(jnp.exp(-jnp.abs(x))))
    p = jax.nn.sigmoid(x)
    dice = (2.0 * jnp.sum(p * t) + 1.0) / (jnp.sum(p) + jnp.sum(t) + 1.0)
    return bce + (1.0 - dice)


if __name__ == "__main__":
    key = jax.random.PRNGKey(0)
    k1, k2, k3, k4 = jax.random.split(key, 4)

    # Small NCHW-like shape (logits + binary targets), as the loss implies.
    predictions = jax.random.normal(k1, (2, 4, 16, 16), dtype=jnp.float32)
    targets = (jax.random.uniform(k2, (2, 4, 16, 16)) > 0.5).astype(jnp.float32)
    loss = jax.block_until_ready(combined_loss(predictions, targets))
    ref = jax.block_until_ready(_reference(predictions, targets))
    assert jnp.allclose(loss, ref, rtol=1e-5, atol=1e-5), (loss, ref)

    # Odd size exercising the mask-free padded-tail path.
    p2 = jax.random.normal(k3, (1, 3, 7, 11), dtype=jnp.float32)
    t2 = (jax.random.uniform(k4, (1, 3, 7, 11)) > 0.5).astype(jnp.float32)
    loss2 = jax.block_until_ready(combined_loss(p2, t2))
    ref2 = jax.block_until_ready(_reference(p2, t2))
    assert jnp.allclose(loss2, ref2, rtol=1e-5, atol=1e-5), (loss2, ref2)

    print("KERNEL_OK")
</pallas_src>

<mosaic_0001>
module attributes {stable_mosaic.version = 11 : i64} {
  func.func @_combined_loss_kernel(%arg0: i32, %arg1: i32, %arg2: memref<16x128xf32, #tpu.memory_space<vmem>>, %arg3: memref<16x128xf32, #tpu.memory_space<vmem>>, %arg4: memref<1x4x8x128xf32, #tpu.memory_space<vmem>>, %arg5: memref<4x8x128xf32, #tpu.memory_space<vmem>>) attributes {dimension_semantics = [#tpu.dimension_semantics<parallel>, #tpu.dimension_semantics<arbitrary>], iteration_bounds = array<i64: 1, 1>, scalar_prefetch = 0 : i64, scratch_operands = 1 : i64, tpu.core_type = #tpu.core_type<tc>, window_params = [{transform_indices = @transform_0, window_bounds = array<i64: 16, 128>}, {transform_indices = @transform_1, window_bounds = array<i64: 16, 128>}, {transform_indices = @transform_2, window_bounds = array<i64: 1, 4, 8, 128>}]} {
    %c0_i32 = arith.constant 0 : i32
    %0 = arith.cmpi eq, %arg1, %c0_i32 : i32
    %1 = arith.extui %0 : i1 to i32
    %c0_i32_0 = arith.constant 0 : i32
    %2 = arith.cmpi ne, %1, %c0_i32_0 : i32
    scf.if %2 {
      %cst_33 = arith.constant 0.000000e+00 : f32
      %55 = vector.broadcast %cst_33 : f32 to vector<4x8x128xf32>
      %c0_34 = arith.constant 0 : index
      %c0_35 = arith.constant 0 : index
      %c0_36 = arith.constant 0 : index
      %56 = vector.load %arg5[%c0_34, %c0_35, %c0_36] : memref<4x8x128xf32, #tpu.memory_space<vmem>>, vector<4x8x128xf32>
      tpu.vector_store %arg5[%c0_34, %c0_35, %c0_36], %55 {strides = array<i32>} : memref<4x8x128xf32, #tpu.memory_space<vmem>>, vector<4x8x128xf32>,
    } else {
    }
    %c0 = arith.constant 0 : index
    %c0_1 = arith.constant 0 : index
    %3 = vector.load %arg2[%c0, %c0_1] : memref<16x128xf32, #tpu.memory_space<vmem>>, vector<16x128xf32>
    %c0_2 = arith.constant 0 : index
    %c0_3 = arith.constant 0 : index
    %4 = vector.load %arg3[%c0_2, %c0_3] : memref<16x128xf32, #tpu.memory_space<vmem>>, vector<16x128xf32>
    %5 = arith.negf %3 : vector<16x128xf32>
    %6 = math.exp %5 : vector<16x128xf32>
    %cst = arith.constant 1.000000e+00 : f32
    %7 = vector.broadcast %cst : f32 to vector<16x128xf32>
    %8 = arith.addf %7, %6 : vector<16x128xf32>
    %9 = arith.divf %7, %8 : vector<16x128xf32>
    %cst_4 = arith.constant 0.000000e+00 : f32
    %10 = vector.broadcast %cst_4 : f32 to vector<16x128xf32>
    %11 = arith.maximumf %3, %10 : vector<16x128xf32>
    %12 = arith.mulf %3, %4 : vector<16x128xf32>
    %13 = arith.subf %11, %12 : vector<16x128xf32>
    %cst_5 = arith.constant 1.000000e+00 : f32
    %14 = vector.broadcast %cst_5 : f32 to vector<16x128xf32>
    %15 = arith.subf %14, %9 : vector<16x128xf32>
    %16 = arith.maximumf %9, %15 : vector<16x128xf32>
    %17 = math.log %16 : vector<16x128xf32>
    %18 = arith.subf %13, %17 : vector<16x128xf32>
    %c0_6 = arith.constant 0 : index
    %c0_7 = arith.constant 0 : index
    %c0_8 = arith.constant 0 : index
    %19 = vector.load %arg5[%c0_6, %c0_7, %c0_8] : memref<4x8x128xf32, #tpu.memory_space<vmem>>, vector<1x8x128xf32>
    %20 = vector.shape_cast %19 : vector<1x8x128xf32> to vector<8x128xf32>
    %21 = vector.shape_cast %18 : vector<16x128xf32> to vector<2x8x128xf32>
    %cst_9 = arith.constant dense<0.000000e+00> : vector<8x128xf32>
    %22 = vector.multi_reduction <add>, %21, %cst_9 [0] : vector<2x8x128xf32> to vector<8x128xf32>
    %23 = arith.addf %20, %22 : vector<8x128xf32>
    %c0_10 = arith.constant 0 : index
    %c0_11 = arith.constant 0 : index
    %c0_12 = arith.constant 0 : index
    %24 = vector.load %arg5[%c0_10, %c0_11, %c0_12] : memref<4x8x128xf32, #tpu.memory_space<vmem>>, vector<1x8x128xf32>
    %25 = vector.shape_cast %24 : vector<1x8x128xf32> to vector<8x128xf32>
    %26 = vector.shape_cast %23 : vector<8x128xf32> to vector<1x8x128xf32>
    tpu.vector_store %arg5[%c0_10, %c0_11, %c0_12], %26 {strides = array<i32>} : memref<4x8x128xf32, #tpu.memory_space<vmem>>, vector<1x8x128xf32>,
    %c1 = arith.constant 1 : index
    %c0_13 = arith.constant 0 : index
    %c0_14 = arith.constant 0 : index
    %27 = vector.load %arg5[%c1, %c0_13, %c0_14] : memref<4x8x128xf32, #tpu.memory_space<vmem>>, vector<1x8x128xf32>
    %28 = vector.shape_cast %27 : vector<1x8x128xf32> to vector<8x128xf32>
    %29 = arith.mulf %9, %4 : vector<16x128xf32>
    %30 = vector.shape_cast %29 : vector<16x128xf32> to vector<2x8x128xf32>
    %cst_15 = arith.constant dense<0.000000e+00> : vector<8x128xf32>
    %31 = vector.multi_reduction <add>, %30, %cst_15 [0] : vector<2x8x128xf32> to vector<8x128xf32>
    %32 = arith.addf %28, %31 : vector<8x128xf32>
    %c1_16 = arith.constant 1 : index
    %c0_17 = arith.constant 0 : index
    %c0_18 = arith.constant 0 : index
    %33 = vector.load %arg5[%c1_16, %c0_17, %c0_18] : memref<4x8x128xf32, #tpu.memory_space<vmem>>, vector<1x8x128xf32>
    %34 = vector.shape_cast %33 : vector<1x8x128xf32> to vector<8x128xf32>
    %35 = vector.shape_cast %32 : vector<8x128xf32> to vector<1x8x128xf32>
    tpu.vector_store %arg5[%c1_16, %c0_17, %c0_18], %35 {strides = array<i32>} : memref<4x8x128xf32, #tpu.memory_space<vmem>>, vector<1x8x128xf32>,
    %c2 = arith.constant 2 : index
    %c0_19 = arith.constant 0 : index
    %c0_20 = arith.constant 0 : index
    %36 = vector.load %arg5[%c2, %c0_19, %c0_20] : memref<4x8x128xf32, #tpu.memory_space<vmem>>, vector<1x8x128xf32>
    %37 = vector.shape_cast %36 : vector<1x8x128xf32> to vector<8x128xf32>
    %38 = vector.shape_cast %9 : vector<16x128xf32> to vector<2x8x128xf32>
    %cst_21 = arith.constant dense<0.000000e+00> : vector<8x128xf32>
    %39 = vector.multi_reduction <add>, %38, %cst_21 [0] : vector<2x8x128xf32> to vector<8x128xf32>
    %40 = arith.addf %37, %39 : vector<8x128xf32>
    %c2_22 = arith.constant 2 : index
    %c0_23 = arith.constant 0 : index
    %c0_24 = arith.constant 0 : index
    %41 = vector.load %arg5[%c2_22, %c0_23, %c0_24] : memref<4x8x128xf32, #tpu.memory_space<vmem>>, vector<1x8x128xf32>
    %42 = vector.shape_cast %41 : vector<1x8x128xf32> to vector<8x128xf32>
    %43 = vector.shape_cast %40 : vector<8x128xf32> to vector<1x8x128xf32>
    tpu.vector_store %arg5[%c2_22, %c0_23, %c0_24], %43 {strides = array<i32>} : memref<4x8x128xf32, #tpu.memory_space<vmem>>, vector<1x8x128xf32>,
    %c3 = arith.constant 3 : index
    %c0_25 = arith.constant 0 : index
    %c0_26 = arith.constant 0 : index
    %44 = vector.load %arg5[%c3, %c0_25, %c0_26] : memref<4x8x128xf32, #tpu.memory_space<vmem>>, vector<1x8x128xf32>
    %45 = vector.shape_cast %44 : vector<1x8x128xf32> to vector<8x128xf32>
    %46 = vector.shape_cast %4 : vector<16x128xf32> to vector<2x8x128xf32>
    %cst_27 = arith.constant dense<0.000000e+00> : vector<8x128xf32>
    %47 = vector.multi_reduction <add>, %46, %cst_27 [0] : vector<2x8x128xf32> to vector<8x128xf32>
    %48 = arith.addf %45, %47 : vector<8x128xf32>
    %c3_28 = arith.constant 3 : index
    %c0_29 = arith.constant 0 : index
    %c0_30 = arith.constant 0 : index
    %49 = vector.load %arg5[%c3_28, %c0_29, %c0_30] : memref<4x8x128xf32, #tpu.memory_space<vmem>>, vector<1x8x128xf32>
    %50 = vector.shape_cast %49 : vector<1x8x128xf32> to vector<8x128xf32>
    %51 = vector.shape_cast %48 : vector<8x128xf32> to vector<1x8x128xf32>
    tpu.vector_store %arg5[%c3_28, %c0_29, %c0_30], %51 {strides = array<i32>} : memref<4x8x128xf32, #tpu.memory_space<vmem>>, vector<1x8x128xf32>,
    %c0_i32_31 = arith.constant 0 : i32
    %52 = arith.cmpi eq, %arg1, %c0_i32_31 : i32
    %53 = arith.extui %52 : i1 to i32
    %c0_i32_32 = arith.constant 0 : i32
    %54 = arith.cmpi ne, %53, %c0_i32_32 : i32
    scf.if %54 {
      %c0_33 = arith.constant 0 : index
      %c0_34 = arith.constant 0 : index
      %c0_35 = arith.constant 0 : index
      %55 = vector.load %arg5[%c0_33, %c0_34, %c0_35] : memref<4x8x128xf32, #tpu.memory_space<vmem>>, vector<4x8x128xf32>
      %c0_36 = arith.constant 0 : index
      %c0_37 = arith.constant 0 : index
      %c0_38 = arith.constant 0 : index
      %c0_39 = arith.constant 0 : index
      %56 = vector.load %arg4[%c0_36, %c0_37, %c0_38, %c0_39] : memref<1x4x8x128xf32, #tpu.memory_space<vmem>>, vector<1x4x8x128xf32>
      %57 = vector.shape_cast %56 : vector<1x4x8x128xf32> to vector<4x8x128xf32>
      %58 = vector.shape_cast %55 : vector<4x8x128xf32> to vector<1x4x8x128xf32>
      tpu.vector_store %arg4[%c0_36, %c0_37, %c0_38, %c0_39], %58 {strides = array<i32>} : memref<1x4x8x128xf32, #tpu.memory_space<vmem>>, vector<1x4x8x128xf32>,
    } else {
    }
    return
  }
  func.func @transform_0(%arg0: i32, %arg1: i32) -> (i32, i32) {
    %c1_i32 = arith.constant 1 : i32
    %0 = arith.muli %arg0, %c1_i32 : i32
    %1 = arith.addi %0, %arg1 : i32
    %c0_i32 = arith.constant 0 : i32
    %c0_i32_0 = arith.constant 0 : i32
    return %1, %c0_i32 : i32, i32
  }
  func.func @transform_1(%arg0: i32, %arg1: i32) -> (i32, i32) {
    %c1_i32 = arith.constant 1 : i32
    %0 = arith.muli %arg0, %c1_i32 : i32
    %1 = arith.addi %0, %arg1 : i32
    %c0_i32 = arith.constant 0 : i32
    %c0_i32_0 = arith.constant 0 : i32
    return %1, %c0_i32 : i32, i32
  }
  func.func @transform_2(%arg0: i32, %arg1: i32) -> (i32, i32, i32, i32) {
    %c0_i32 = arith.constant 0 : i32
    %c0_i32_0 = arith.constant 0 : i32
    %c0_i32_1 = arith.constant 0 : i32
    %c0_i32_2 = arith.constant 0 : i32
    return %arg0, %c0_i32, %c0_i32_0, %c0_i32_1 : i32, i32, i32, i32
  }
}

</mosaic_0001>

<bundles_post_ra>
// kernel: tpu_custom_call.1
= control target key start
LH: loop header
LB: loop body
LE: loop exit
PB: predicated region body
PF: predicated region fallthrough
CT: control target
= control target key end

     0   :  { %7 = vsyncpa [#allocation4], 0  ;;  %s309_s0 = inlined_call_operand.hbm [shape: f32[16,128], index: 0, kind: input, shape index: {}]   ;;  %s310_s1 = inlined_call_operand.hbm [shape: f32[16,128], index: 1, kind: input, shape index: {}]   ;;  %s311_s2 = inlined_call_operand.hbm [shape: f32[1,4,8,128], index: 2, kind: output, shape index: {}]  }
   0x1   :  { %8 = vsyncpa [#allocation7], 0 }
   0x2   :  { %9 = vsyncpa [#allocation5], 0  ;;  %s18_s11 = sshll.u32 %s309_s0, 4  ;;  %s271_s12 = smov [#allocation3]   ;;  %s19_s11 = int_to_ptr.hbm [resolvable:$true] %s18_s11 }
   0x3   :  { %s20_s13 = sshll.u32 %s271_s12, 4  ;;  %s35_s16 = sshll.u32 %s310_s1, 4  ;;  %s21_s13 = int_to_ptr.vmem [resolvable:$true] %s20_s13  ;;  %s36_s16 = int_to_ptr.hbm [resolvable:$true] %s35_s16 }
   0x4   :  { %s272_s17 = smov 128   ;;  %s273_s18 = smov 8  }
   0x5   :  { %26 = dma.hbm_to_vmem [thread:$0]  %s19_s11, 256, %s21_s13, [#allocation4], %s272_s17, %s272_s17, %s273_s18  }
   0x6   :  { %s274_s19 = smov [#allocation6]  }
   0x7   :  { %s37_s20 = sshll.u32 %s274_s19, 4  ;;  %s38_s20 = int_to_ptr.vmem [resolvable:$true] %s37_s20 }
   0x8   :  { %43 = dma.hbm_to_vmem [thread:$0]  %s36_s16, 256, %s38_s20, [#allocation7], %s272_s17, %s272_s17, %s273_s18  }
   0x9   :  { %265 = dma.done.wait [#allocation4], 256  }
   0xa   :  { %266 = vsyncadd [#allocation4], 4294967040 }
   0xb   :  { %267 = dma.done.wait [#allocation7], 256  }
   0xc   :  { %268 = vsyncadd [#allocation7], 4294967040  ;;  %v64_v0 = vld [vmem:[#allocation3] sm:$0xff]  ;;  %v65_v1 = vld [vmem:[#allocation3 + $0x8] sm:$0xff]  ;;  %s275_s0 = smov [#allocation8]   ;;  %s160_s23 = sshll.u32 %s311_s2, 4  ;;  %s161_s23 = int_to_ptr.hbm [resolvable:$true] %s160_s23 }
   0xd   :  { %v174_v2 = vmul.f32 -1.442695, %v64_v0  ;;  %v175_v3 = vmul.f32 -1.442695, %v65_v1  ;;  %v66_v8 = vld [vmem:[#allocation6] sm:$0xff]  ;;  %v67_v9 = vld [vmem:[#allocation6 + $0x8] sm:$0xff] }
   0xe   :  { %v140_v10 = vadd.f32 %v67_v9, %v66_v8  ;;  %v106_v39 = vmax.f32 %v64_v0, 0.0  ;;  %v108_v40 = vmul.f32 %v66_v8, %v64_v0  ;;  %v107_v41 = vmax.f32 %v65_v1, 0.0  ;;  %s158_s1 = sshll.u32 %s275_s0, 4  ;;  %s159_s1 = int_to_ptr.vmem [resolvable:$true] %s158_s1 }
   0xf   :  { %181 = vpow2.f32 %v174_v2  ;;  %v109_v42 = vmul.f32 %v67_v9, %v65_v1 }
  0x10   :  { %183 = vpow2.f32 %v175_v3  ;;  %153 = vst [vmem:[#allocation8 + $0x18] sm:$0xff] %v140_v10  ;;  %v110_v43 = vsub.f32 %v106_v39, %v108_v40 }
  0x11   :  { %v111_v45 = vsub.f32 %v107_v41, %v109_v42 }
  0x15   :  { %v182_v4 = vpop.eup %181 }
  0x16   :  { %v184_v5 = vpop.eup %183  ;;  %v74_v6 = vadd.f32 1.0, %v182_v4 }
  0x17   :  { %v75_v7 = vadd.f32 1.0, %v184_v5 }
  0x18   :  { %185 = vrcp.f32 %v74_v6  ;;  %vm81_vm0 = vweird.f32 %v74_v6  ;;  %v87_v14 = vand.u32 2147483648, %v74_v6  ;;  %v85_v17 = vand.u32 2147483647, %v74_v6 }
  0x19   :  { %187 = vrcp.f32 %v75_v7  ;;  %v102_v18 = vand.u32 2147483648, %v75_v7  ;;  %vm96_vm2 = vweird.f32 %v75_v7  ;;  %v100_v20 = vand.u32 2147483647, %v75_v7 }
  0x1a   :  { %v88_v22 = vor.u32 1.1754944e-38, %v87_v14  ;;  %vm86_vm5 = vcmp.eq.f32.partialorder %v85_v17, 8.507059e+37 }
  0x1b   :  { %v103_v25 = vor.u32 1.1754944e-38, %v102_v18  ;;  %vm101_vm7 = vcmp.eq.f32.partialorder %v100_v20, 8.507059e+37 }
  0x1e   :  { %v186_v11 = vpop.eup %185 }
  0x1f   :  { %v188_v12 = vpop.eup %187  ;;  %v77_v13 = vmul.f32 %v186_v11, %v74_v6  ;;  %vm82_vm1 = vweird.f32 %v186_v11 }
  0x20   :  { %v92_v15 = vmul.f32 %v188_v12, %v75_v7  ;;  %vm97_vm3 = vweird.f32 %v188_v12  ;;  %vm83_vm4 = vmor %vm81_vm0, %vm82_vm1 }
  0x21   :  { %v78_v16 = vsub.f32 1.0, %v77_v13  ;;  %vm98_vm6 = vmor %vm96_vm2, %vm97_vm3 }
  0x22   :  { %v93_v19 = vsub.f32 1.0, %v92_v15 }
  0x23   :  { %v79_v21 = vmul.f32 %v186_v11, %v78_v16 }
  0x24   :  { %v94_v23 = vmul.f32 %v188_v12, %v93_v19 }
  0x25   :  { %v80_v24 = vadd.f32 %v186_v11, %v79_v21 }
  0x26   :  { %v95_v26 = vadd.f32 %v188_v12, %v94_v23 }
  0x27   :  { %v84_v27 = vsel %vm83_vm4, %v186_v11, %v80_v24 }
  0x28   :  { %v89_v28 = vsel %vm86_vm5, %v88_v22, %v84_v27  ;;  %v99_v29 = vsel %vm98_vm6, %v188_v12, %v95_v26 }
  0x29   :  { %v104_v30 = vsel %vm101_vm7, %v103_v25, %v99_v29  ;;  %v112_v31 = vsub.f32 1.0, %v89_v28  ;;  %v128_v32 = vmul.f32 %v89_v28, %v66_v8 }
  0x2a   :  { %v113_v33 = vsub.f32 1.0, %v104_v30  ;;  %v129_v34 = vmul.f32 %v104_v30, %v67_v9  ;;  %v135_v35 = vadd.f32 %v104_v30, %v89_v28 }
  0x2b   :  { %v114_v36 = vmax.f32 %v89_v28, %v112_v31 }
  0x2c   :  { %v115_v37 = vmax.f32 %v104_v30, %v113_v33  ;;  %v130_v38 = vadd.f32 %v129_v34, %v128_v32  ;;  %152 = vst [vmem:[#allocation8 + $0x10] sm:$0xff] %v135_v35 }
  0x2d   :  { %189 = vlog2.f32 %v114_v36 }
  0x2e   :  { %191 = vlog2.f32 %v115_v37  ;;  %151 = vst [vmem:[#allocation8 + $0x8] sm:$0xff] %v130_v38 }
  0x33   :  { %v190_v44 = vpop.eup %189 }
  0x34   :  { %v192_v46 = vpop.eup %191  ;;  %v117_v47 = vmul.f32 0.6931472, %v190_v44 }
  0x35   :  { %v119_v48 = vmul.f32 0.6931472, %v192_v46 }
  0x36   :  { %v120_v49 = vsub.f32 %v110_v43, %v117_v47 }
  0x37   :  { %v121_v50 = vsub.f32 %v111_v45, %v119_v48 }
  0x39   :  { %v123_v51 = vadd.f32 %v121_v50, %v120_v49 }
  0x3b   :  { %150 = vst [vmem:[#allocation8] sm:$0xff] %v123_v51 }
  0x3c   :  { %166 = dma.vmem_to_hbm [thread:$0]  %s159_s1, 512, %s161_s23, [#allocation5], %s272_s17, %s272_s17, %s273_s18  }
  0x3d   :  { %269 = dma.done.wait [#allocation5], 512  }
  0x3e   :  { %270 = vsyncadd [#allocation5], 4294966784 }
  0x3f   :  { %171 = vsyncpa [#allocation4], 1 }
  0x40   :  { %172 = vsyncpa [#allocation7], 1 }
  0x41   :  { %173 = vsyncpa [#allocation5], 1 }

</bundles_post_ra>
